<compile_context>
chip_gen: v7x
topology: tpu7x:2x2x1
jax: 0.10.0
libtpu: 0.0.40
codegen_flags: <defaults>
</compile_context>

<pallas_src>
import math

import jax
import jax.numpy as jnp
from jax import lax
from jax.experimental import pallas as pl
from jax.experimental.pallas import tpu as pltpu


def vae_kernel(x_ref, eps_ref, w_ref, b_ref, z_ref, kl_ref):
    D = eps_ref.shape[-1]

    # z_net: Linear(input_dim, 2*D) on the MXU, f32 accumulation.
    h = jnp.dot(x_ref[...], w_ref[...],
                preferred_element_type=jnp.float32) + b_ref[...]
    mean = h[:, :D]                      # q(z|x) mean
    std = jax.nn.softplus(h[:, D:])      # q(z|x) std (softplus, as in rsample)

    # Reparameterized sample; lane-dense store (last dim = D).
    z_ref[...] = (mean + std * eps_ref[...]).astype(z_ref.dtype)

    # KL( N(mean, std) || N(0, 1) ) per element, reduced over D on the MXU:
    # (1, D) x (TB, D)^T -> (1, TB), so the per-sample KL lands on the lane
    # axis and the store is a full-lane vst into the (1, B) output row.
    kl_el = 0.5 * (std * std + mean * mean - 1.0) - jnp.log(std)   # (TB, D)
    ones_row = jnp.ones((1, D), jnp.float32)
    kl_ref[...] = lax.dot_general(
        ones_row, kl_el,
        dimension_numbers=(((1,), (1,)), ((), ())),
        preferred_element_type=jnp.float32).astype(kl_ref.dtype)


def _round_up(n, m):
    return ((n + m - 1) // m) * m


def vae_forward(x, params, eps, *, block_b=128):
    """Mirrors VAE.forward: returns (z, total_kl, infos)."""
    W = params["W"]                 # (input_dim, 2*D)  == torch Linear weight.T
    b = params["b"]                 # (2*D,)
    B, in_dim = x.shape
    two_d = W.shape[1]
    D = two_d // 2
    assert eps.shape == (B, D)

    # Batch tile: multiple of 8 sublanes, capped at block_b; pad B up to a
    # whole number of tiles (padded rows sliced off below).
    tb = min(block_b, _round_up(B, 8))
    Bp = _round_up(B, tb)
    if Bp != B:
        pad = Bp - B
        x = jnp.pad(x, ((0, pad), (0, 0)))
        eps = jnp.pad(eps, ((0, pad), (0, 0)))

    b2 = b.reshape(1, two_d)

    z_p, kl_p = pl.pallas_call(
        vae_kernel,
        out_shape=(
            jax.ShapeDtypeStruct((Bp, D), jnp.float32),   # z
            jax.ShapeDtypeStruct((1, Bp), jnp.float32),   # KL, batch on lanes
        ),
        grid=(Bp // tb,),
        in_specs=[
            pl.BlockSpec((tb, in_dim), lambda i: (i, 0)),     # x tile
            pl.BlockSpec((tb, D), lambda i: (i, 0)),          # eps tile
            pl.BlockSpec((in_dim, two_d), lambda i: (0, 0)),  # W (VMEM-resident)
            pl.BlockSpec((1, two_d), lambda i: (0, 0)),       # b (VMEM-resident)
        ],
        out_specs=[
            pl.BlockSpec((tb, D), lambda i: (i, 0)),
            pl.BlockSpec((1, tb), lambda i: (0, i)),
        ],
        compiler_params=pltpu.CompilerParams(
            dimension_semantics=("parallel",)),
    )(x, eps, W, b2)

    z = z_p[:B]
    total_kl = kl_p[0, :B]

    infos = dict(
        enc_x=z,
        enc_x_cat=None,
        gmvae_kl_total=jnp.mean(total_kl),
    )
    return z, total_kl, infos


def vae_reference(x, params, eps):
    """Pure-JAX reference of the torch forward pass."""
    W, b = params["W"], params["b"]
    D = W.shape[1] // 2
    h = x @ W + b
    mean, raw = h[:, :D], h[:, D:]
    std = jax.nn.softplus(raw)
    z = mean + std * eps
    kl = jnp.sum(0.5 * (std * std + mean * mean - 1.0) - jnp.log(std), axis=-1)
    return z, kl


def init_params(input_dim, output_dim, seed=42):
    k1, k2 = jax.random.split(jax.random.PRNGKey(seed))
    # nn.Linear(input_dim, 2*output_dim); weight stored pre-transposed (in, out).
    W = (jax.random.normal(k1, (input_dim, 2 * output_dim), jnp.float32)
         * (1.0 / math.sqrt(input_dim)))
    b = jax.random.normal(k2, (2 * output_dim,), jnp.float32) * 0.01
    return dict(W=W, b=b)


if __name__ == "__main__":
    B, input_dim, output_dim = 256, 128, 128   # two 128-row batch tiles

    params = init_params(input_dim, output_dim)

    key = jax.random.PRNGKey(0)
    kx, ke = jax.random.split(key)
    x = jax.random.normal(kx, (B, input_dim), jnp.float32)
    eps = jax.random.normal(ke, (B, output_dim), jnp.float32)

    z, total_kl, infos = jax.jit(vae_forward)(x, params, eps)
    jax.block_until_ready((z, total_kl, infos["gmvae_kl_total"]))

    z_exp, kl_exp = vae_reference(x, params, eps)

    assert z.shape == (B, output_dim)
    assert total_kl.shape == (B,)
    assert infos["enc_x_cat"] is None
    assert bool(jnp.all(jnp.isfinite(z)))
    assert bool(jnp.all(jnp.isfinite(total_kl)))
    assert bool(jnp.allclose(z, z_exp, rtol=1e-2, atol=1e-2))
    assert bool(jnp.allclose(total_kl, kl_exp, rtol=1e-2, atol=1e-2))

    print("KERNEL_OK")
</pallas_src>

<mosaic_0001>
module attributes {stable_mosaic.version = 11 : i64} {
  func.func @vae_kernel(%arg0: i32, %arg1: memref<128x128xf32, #tpu.memory_space<vmem>>, %arg2: memref<128x128xf32, #tpu.memory_space<vmem>>, %arg3: memref<128x256xf32, #tpu.memory_space<vmem>>, %arg4: memref<1x256xf32, #tpu.memory_space<vmem>>, %arg5: memref<128x128xf32, #tpu.memory_space<vmem>>, %arg6: memref<1x128xf32, #tpu.memory_space<vmem>>) attributes {dimension_semantics = [#tpu.dimension_semantics<parallel>], iteration_bounds = array<i64: 2>, scalar_prefetch = 0 : i64, scratch_operands = 0 : i64, tpu.core_type = #tpu.core_type<tc>, window_params = [{transform_indices = @transform_0, window_bounds = array<i64: 128, 128>}, {transform_indices = @transform_1, window_bounds = array<i64: 128, 128>}, {pipeline_mode = #tpu.pipeline_mode<synchronous>, transform_indices = @transform_2, window_bounds = array<i64: 128, 256>}, {pipeline_mode = #tpu.pipeline_mode<synchronous>, transform_indices = @transform_3, window_bounds = array<i64: 1, 256>}, {transform_indices = @transform_4, window_bounds = array<i64: 128, 128>}, {transform_indices = @transform_5, window_bounds = array<i64: 1, 128>}]} {
    %c0 = arith.constant 0 : index
    %c0_0 = arith.constant 0 : index
    %0 = vector.load %arg1[%c0, %c0_0] : memref<128x128xf32, #tpu.memory_space<vmem>>, vector<128x128xf32>
    %c0_1 = arith.constant 0 : index
    %c0_2 = arith.constant 0 : index
    %1 = vector.load %arg3[%c0_1, %c0_2] : memref<128x256xf32, #tpu.memory_space<vmem>>, vector<128x256xf32>
    %cst = arith.constant dense<0.000000e+00> : vector<128x256xf32>
    %2 = tpu.matmul %0, %1, %cst {dimension_numbers = #tpu.dot_dimension_numbers<[1], [0], [0], [1], [0, 0, 1, 1], [], []>} : vector<128x128xf32>, vector<128x256xf32>, vector<128x256xf32> -> vector<128x256xf32>
    %c0_3 = arith.constant 0 : index
    %c0_4 = arith.constant 0 : index
    %3 = vector.load %arg4[%c0_3, %c0_4] : memref<1x256xf32, #tpu.memory_space<vmem>>, vector<1x256xf32>
    %4 = vector.broadcast %3 : vector<1x256xf32> to vector<128x256xf32>
    %5 = arith.addf %2, %4 : vector<128x256xf32>
    %6 = vector.extract_strided_slice %5 {offsets = [0, 0], sizes = [128, 128], strides = [1, 1]} : vector<128x256xf32> to vector<128x128xf32>
    %7 = vector.extract_strided_slice %5 {offsets = [0, 128], sizes = [128, 128], strides = [1, 1]} : vector<128x256xf32> to vector<128x128xf32>
    %cst_5 = arith.constant 0.000000e+00 : f32
    %8 = vector.broadcast %cst_5 : f32 to vector<128x128xf32>
    %9 = arith.maximumf %7, %8 : vector<128x128xf32>
    %10 = vector.broadcast %cst_5 : f32 to vector<128x128xf32>
    %11 = arith.subf %7, %10 : vector<128x128xf32>
    %12 = arith.cmpf one, %11, %11 : vector<128x128xf32>
    %13 = vector.broadcast %cst_5 : f32 to vector<128x128xf32>
    %14 = arith.addf %7, %13 : vector<128x128xf32>
    %15 = math.absf %11 : vector<128x128xf32>
    %cst_6 = arith.constant 0.000000e+00 : f32
    %16 = vector.broadcast %cst_6 : f32 to vector<128x128xf32>
    %17 = arith.subf %16, %15 : vector<128x128xf32>
    %18 = math.exp %17 : vector<128x128xf32>
    %19 = math.log1p %18 : vector<128x128xf32>
    %20 = arith.addf %9, %19 : vector<128x128xf32>
    %21 = arith.select %12, %14, %20 : vector<128x128xi1>, vector<128x128xf32>
    %c0_7 = arith.constant 0 : index
    %c0_8 = arith.constant 0 : index
    %22 = vector.load %arg2[%c0_7, %c0_8] : memref<128x128xf32, #tpu.memory_space<vmem>>, vector<128x128xf32>
    %23 = arith.mulf %21, %22 : vector<128x128xf32>
    %24 = arith.addf %6, %23 : vector<128x128xf32>
    %c0_9 = arith.constant 0 : index
    %c0_10 = arith.constant 0 : index
    %25 = vector.load %arg5[%c0_9, %c0_10] : memref<128x128xf32, #tpu.memory_space<vmem>>, vector<128x128xf32>
    tpu.vector_store %arg5[%c0_9, %c0_10], %24 {strides = array<i32>} : memref<128x128xf32, #tpu.memory_space<vmem>>, vector<128x128xf32>,
    %26 = arith.mulf %21, %21 : vector<128x128xf32>
    %27 = arith.mulf %6, %6 : vector<128x128xf32>
    %28 = arith.addf %26, %27 : vector<128x128xf32>
    %cst_11 = arith.constant 1.000000e+00 : f32
    %29 = vector.broadcast %cst_11 : f32 to vector<128x128xf32>
    %30 = arith.subf %28, %29 : vector<128x128xf32>
    %cst_12 = arith.constant 5.000000e-01 : f32
    %31 = vector.broadcast %cst_12 : f32 to vector<128x128xf32>
    %32 = arith.mulf %31, %30 : vector<128x128xf32>
    %33 = math.log %21 : vector<128x128xf32>
    %34 = arith.subf %32, %33 : vector<128x128xf32>
    %cst_13 = arith.constant 1.000000e+00 : f32
    %35 = vector.broadcast %cst_13 : f32 to vector<1x128xf32>
    %cst_14 = arith.constant dense<0.000000e+00> : vector<1x128xf32>
    %36 = tpu.matmul %35, %34, %cst_14 {dimension_numbers = #tpu.dot_dimension_numbers<[1], [1], [0], [0], [0, 0, 1, 0], [], []>} : vector<1x128xf32>, vector<128x128xf32>, vector<1x128xf32> -> vector<1x128xf32>
    %c0_15 = arith.constant 0 : index
    %c0_16 = arith.constant 0 : index
    %37 = vector.load %arg6[%c0_15, %c0_16] : memref<1x128xf32, #tpu.memory_space<vmem>>, vector<1x128xf32>
    tpu.vector_store %arg6[%c0_15, %c0_16], %36 {strides = array<i32>} : memref<1x128xf32, #tpu.memory_space<vmem>>, vector<1x128xf32>,
    return
  }
  func.func @transform_0(%arg0: i32) -> (i32, i32) {
    %c0_i32 = arith.constant 0 : i32
    %c0_i32_0 = arith.constant 0 : i32
    return %arg0, %c0_i32 : i32, i32
  }
  func.func @transform_1(%arg0: i32) -> (i32, i32) {
    %c0_i32 = arith.constant 0 : i32
    %c0_i32_0 = arith.constant 0 : i32
    return %arg0, %c0_i32 : i32, i32
  }
  func.func @transform_2(%arg0: i32) -> (i32, i32) {
    %c0_i32 = arith.constant 0 : i32
    %c0_i32_0 = arith.constant 0 : i32
    %c0_i32_1 = arith.constant 0 : i32
    return %c0_i32, %c0_i32_0 : i32, i32
  }
  func.func @transform_3(%arg0: i32) -> (i32, i32) {
    %c0_i32 = arith.constant 0 : i32
    %c0_i32_0 = arith.constant 0 : i32
    %c0_i32_1 = arith.constant 0 : i32
    return %c0_i32, %c0_i32_0 : i32, i32
  }
  func.func @transform_4(%arg0: i32) -> (i32, i32) {
    %c0_i32 = arith.constant 0 : i32
    %c0_i32_0 = arith.constant 0 : i32
    return %arg0, %c0_i32 : i32, i32
  }
  func.func @transform_5(%arg0: i32) -> (i32, i32) {
    %c0_i32 = arith.constant 0 : i32
    %c0_i32_0 = arith.constant 0 : i32
    return %c0_i32, %arg0 : i32, i32
  }
}

</mosaic_0001>

<bundles_post_ra>
// kernel: vae_forward.1
= control target key start
LH: loop header
LB: loop body
LE: loop exit
PB: predicated region body
PF: predicated region fallthrough
CT: control target
= control target key end

     0   :  { %11 = vsyncpa [#allocation3], 0  ;;  %s2635_s0 = inlined_call_operand.hbm [shape: f32[256,128], index: 0, kind: input, shape index: {}]   ;;  %s2636_s1 = inlined_call_operand.hbm [shape: f32[256,128], index: 1, kind: input, shape index: {}]   ;;  %s2637_s2 = inlined_call_operand.hbm [shape: f32[128,256], index: 2, kind: input, shape index: {}]   ;;  %s2638_s3 = inlined_call_operand.vmem [shape: f32[1,256], index: 3, kind: input, shape index: {}]   ;;  %s2639_s4 = inlined_call_operand.vmem [shape: f32[256,128], index: 4, kind: output, shape index: {0}]   ;;  %s2640_s5 = inlined_call_operand.vmem [shape: f32[1,256], index: 5, kind: output, shape index: {1}]  }
   0x1   :  { %13 = vsyncpa [#allocation3 + $0x1], 0 }
   0x2   :  { %14 = vsyncpa [#allocation5], 0 }
   0x3   :  { %16 = vsyncpa [#allocation5 + $0x1], 0  ;;  %s1684_s18 = smov 0   ;;  %s1686_s19 = smov 0  }
   0x4   :  { %s1688_s20 = smov 0   ;;  %s1690_s21 = smov 0  }
   0x5 LB: > { %s1703_s22 = sadd.s32 4294967295, %s1641_s21   ;;  %p42_p0 = scmp.ne.s32.totalorder %s1633_s19, %s1629_s18  ;;  %s1641_s21 = sphi %s1690_s21, %s2700_s21   ;;  %s1637_s20 = sphi %s1688_s20, %s2699_s20   ;;  %s1633_s19 = sphi %s1686_s19, %s2698_s19   ;;  %s1629_s18 = sphi %s1684_s18, %s2697_s18  }
   0x6   : > { %p2641_p1 = scmp.eq.s32.totalorder %s1703_s22, 0  ;;  %p1209_p2 = scmp.ge.s32.totalorder %s1641_s21, 1 }
   0x7   : > { %p173_p3 = scmp.lt.s32.totalorder %s1641_s21, 3  ;;  %s1643_s25 = smov [#allocation6]  }
   0x8   : > { %p1711_p4 = por %p2641_p1, %p42_p0  ;;  %s185_s26 = sshll.u32 %s1643_s25, 4  ;;  %s186_s26 = int_to_ptr.vmem [resolvable:$true] %s185_s26 }
   0x9   : > { %p1715_p5 = pnand %p1209_p2, %p173_p3  ;;  %s1728_s28 = sadd.s32 1, %s1641_s21  }
   0xa   : > { %s2648_s23 = scalar_select %p1711_p4, 1, 0 }
   0xb   : > { %s2649_s24 = scalar_select %p1715_p5, 1, 0 }
   0xc   : > { %p1360_p6 = pneg %p1715_p5  ;;  %s29_s29 = sadd.s32 1, %s1637_s20 }
   0xd   : > { %s26_s30 = ssub.s32 %s1641_s21, %s1728_s28  ;;  %s1511_s8 = scalar_lea.hbm %s2637_s2, 4096 }
   0xe   : > { %p1723_p7 = pnand %p1360_p6, %p2641_p1  ;;  %p1512_p8 = scmp.ne.s32.totalorder %s2637_s2, %s1511_s8 }
   0xf   : > { %p1518_p12 = scmp.lt.u32.totalorder %s1511_s8, %s2637_s2 }
  0x10   : > { %p1513_p9 = pneg %p1723_p7 }
  0x12   : > { %p1514_p10 = pnand %p1513_p9, %p1512_p8 }
  0x14   : > { %p1515_p11 = pneg %p1514_p10 }
  0x16   : > { %p1520_p13 = pnand %p1518_p12, %p1515_p11 }
  0x18   : > { %1523 = shalt.err (!%p1520_p13)
}
  0x19   : > { %s1524_s13 = scalar_lea.vmem %s186_s26, 4096  ;;  %p1532_p6 = scmp.lt.s32.totalorder %s186_s26, %s186_s26 }
  0x1a   : > { %p1525_p0 = scmp.ne.s32.totalorder %s186_s26, %s1524_s13  ;;  %p1533_p1 = scmp.lt.s32.totalorder %s1524_s13, %s1524_s13 }
  0x1c   : > { %p1527_p2 = pnand %p1525_p0, %p1513_p9  ;;  %p1534_p4 = por %p1533_p1, %p1532_p6 }
  0x1e   : > { %p1528_p3 = pneg %p1527_p2 }
  0x20   : > { %p1535_p5 = pnand %p1534_p4, %p1528_p3 }
  0x22   : > { %1538 = shalt.err (!%p1535_p5)
}
  0x23   : > { %s1644_s14 = smov 256   ;;  %s1645_s15 = smov 16  }
  0x24   : > { %1363 = dma.hbm_to_vmem [thread:$0]  (!%p1723_p7), %s2637_s2, 4096, %s186_s26, [#allocation5], %s1644_s14, %s1644_s14, %s1645_s15  }
  0x25   : > { %p27_p8 = scmp.eq.s32.totalorder %s26_s30, 0  ;;  %p36_p1 = scmp.ne.s32.totalorder %s1637_s20, %s1633_s19 }
  0x26   : > { %p37_p4 = scmp.eq.s32.totalorder %s1641_s21, 0  ;;  %p1372_p5 = scmp.lt.s32.totalorder %s1641_s21, 2 }
  0x27   : > { %s1754_s18 = scalar_select %p27_p8, %s1637_s20, %s29_s29  }
  0x28   : > { %p38_p9 = por %p37_p4, %p36_p1  ;;  %s202_s25 = sand.u32 1, %s1637_s20  }
  0x29   : > { %s1757_s6 = sshll.u32 %s202_s25, 7  ;;  %s1242_s7 = sshll.u32 %s1641_s21, 11 }
  0x2a   : > { %s1765_s27 = scalar_lea.hbm %s2635_s0, %s1242_s7  ;;  %s206_s26 = scalar_lea.vmem [#allocation2], %s1757_s6 }
  0x2b   : > { %s213_s30 = sshll.u32 %s206_s26, 4  ;;  %p1770_p7 = pnand %p1372_p5, %p38_p9  ;;  %s1768_s30 = int_to_ptr.vmem [resolvable:$true] %s213_s30 }
  0x2c   : > { %s1774_s10 = scalar_lea.sflag [#allocation3], %s202_s25  ;;  %s1539_s11 = scalar_lea.hbm %s1765_s27, 2048 }
  0x2d   : > { %p1540_p10 = scmp.ne.s32.totalorder %s1765_s27, %s1539_s11  ;;  %p1541_p11 = pneg %p1770_p7 }
  0x2e   : > { %s1544_s14 = scalar_lea.hbm %s2635_s0, 4096  ;;  %p1545_p0 = scmp.lt.u32.totalorder %s1765_s27, %s2635_s0 }
  0x2f   : > { %p1542_p12 = pnand %p1541_p11, %p1540_p10  ;;  %p1546_p2 = scmp.lt.u32.totalorder %s1544_s14, %s1539_s11 }
  0x30   : > { %p1548_p6 = scmp.lt.u32.totalorder %s1539_s11, %s1765_s27 }
  0x31   : > { %p1543_p13 = pneg %p1542_p12  ;;  %p1547_p3 = por %p1546_p2, %p1545_p0 }
  0x33   : > { %p1549_p8 = por %p1548_p6, %p1547_p3 }
  0x35   : > { %p1550_p1 = pnand %p1549_p8, %p1543_p13 }
  0x37   : > { %1553 = shalt.err (!%p1550_p1)
}
  0x38   : > { %s1554_s17 = scalar_lea.vmem %s1768_s30, 2048  ;;  %s1646_s25 = smov [#allocation2]  }
  0x39   : > { %p1555_p4 = scmp.ne.s32.totalorder %s1768_s30, %s1554_s17  ;;  %s1559_s8 = sshll.u32 %s1646_s25, 4  ;;  %s1560_s8 = int_to_ptr.vmem [resolvable:$false] %s1559_s8 }
  0x3a   : > { %s1561_s9 = scalar_lea.vmem %s1560_s8, 4096  ;;  %p1562_p10 = scmp.lt.s32.totalorder %s1768_s30, %s1560_s8 }
  0x3b   : > { %p1557_p5 = pnand %p1555_p4, %p1541_p11  ;;  %p1563_p12 = scmp.lt.s32.totalorder %s1561_s9, %s1554_s17 }
  0x3d   : > { %p1558_p9 = pneg %p1557_p5  ;;  %p1564_p0 = por %p1563_p12, %p1562_p10 }
  0x3f   : > { %p1565_p2 = pnand %p1564_p0, %p1558_p9 }
  0x41   : > { %1568 = shalt.err (!%p1565_p2)
}
  0x42   : > { %s1647_s26 = smov 128   ;;  %s1648_s11 = smov 8  }
  0x43   : > { %1367 = dma.hbm_to_vmem [thread:$0]  (!%p1770_p7), %s1765_s27, 2048, %s1768_s30, %s1774_s10, %s1647_s26, %s1647_s26, %s1648_s11  }
  0x44   : > { %s1810_s14 = scalar_lea.hbm %s2636_s1, %s1242_s7  ;;  %s227_s15 = scalar_lea.vmem [#allocation4], %s1757_s6 }
  0x45   : > { %s234_s16 = sshll.u32 %s227_s15, 4  ;;  %s223_s17 = sand.u32 1, %s1641_s21   ;;  %s1813_s16 = int_to_ptr.vmem [resolvable:$true] %s234_s16 }
  0x46   : > { %s1816_s25 = scalar_lea.sflag [#allocation5], %s223_s17  ;;  %s1569_s8 = scalar_lea.hbm %s1810_s14, 2048 }
  0x47   : > { %p1570_p13 = scmp.ne.s32.totalorder %s1810_s14, %s1569_s8  ;;  %s1574_s30 = scalar_lea.hbm %s2636_s1, 4096 }
  0x48   : > { %p1575_p8 = scmp.lt.u32.totalorder %s1810_s14, %s2636_s1  ;;  %p1576_p1 = scmp.lt.u32.totalorder %s1574_s30, %s1569_s8 }
  0x49   : > { %p1572_p3 = pnand %p1570_p13, %p1541_p11  ;;  %p1578_p5 = scmp.lt.u32.totalorder %s1569_s8, %s1810_s14 }
  0x4a   : > { %p1577_p4 = por %p1576_p1, %p1575_p8 }
  0x4b   : > { %p1573_p6 = pneg %p1572_p3 }
  0x4c   : > { %p1579_p9 = por %p1578_p5, %p1577_p4 }
  0x4e   : > { %p1580_p10 = pnand %p1579_p9, %p1573_p6 }
  0x50   : > { %1583 = shalt.err (!%p1580_p10)
}
  0x51   : > { %s1584_s21 = scalar_lea.vmem %s1813_s16, 2048  ;;  %s1649_s6 = smov [#allocation4]  }
  0x52   : > { %p1585_p12 = scmp.ne.s32.totalorder %s1813_s16, %s1584_s21  ;;  %s1589_s12 = sshll.u32 %s1649_s6, 4  ;;  %s1590_s12 = int_to_ptr.vmem [resolvable:$false] %s1589_s12 }
  0x53   : > { %s1591_s13 = scalar_lea.vmem %s1590_s12, 4096  ;;  %p1592_p13 = scmp.lt.s32.totalorder %s1813_s16, %s1590_s12 }
  0x54   : > { %p1587_p0 = pnand %p1585_p12, %p1541_p11  ;;  %p1593_p3 = scmp.lt.s32.totalorder %s1591_s13, %s1584_s21 }
  0x56   : > { %p1588_p2 = pneg %p1587_p0  ;;  %p1594_p8 = por %p1593_p3, %p1592_p13 }
  0x58   : > { %p1595_p1 = pnand %p1594_p8, %p1588_p2 }
  0x5a   : > { %1598 = shalt.err (!%p1595_p1)
}
  0x5b   : > { %1370 = dma.hbm_to_vmem [thread:$0]  (!%p1770_p7), %s1810_s14, 2048, %s1813_s16, %s1816_s25, %s1647_s26, %s1647_s26, %s1648_s11  }
  0x5c   : > { %p2652_p11 = scmp.ne.s32.totalorder %s2649_s24, 0 }
  0x5e   : > { %246 = sbr.rel (%p2652_p11) target bundleno = 742 (0x2e6), region = 36 }
  0x65   : > { %s248_s15 = sand.u32 1, %s1633_s19   ;;  %p2653_p6 = scmp.ne.s32.totalorder %s2648_s23, 0 }
  0x66   : > { %s1219_s17 = sshll.u32 %s248_s15, 7  ;;  %s249_s8 = scalar_lea.sflag [#allocation3], %s248_s15 }
  0x67   : > { %s1848_s27 = scalar_lea.vmem [#allocation2], %s1219_s17 }
  0x68   : > { %1616 = dma.done.wait (%p2653_p6), %s249_s8, 2048  }
  0x69   : > { %1618 = vsyncadd (%p2653_p6), %s249_s8, 4294965248  ;;  %s257_s29 = sand.u32 1, %s1703_s22   ;;  %s1855_s26 = scalar_lea.vmem [#allocation4], %s1219_s17 }
  0x6a   : > { %s258_s7 = scalar_lea.sflag [#allocation5], %s257_s29 }
  0x6b   : > { %1620 = dma.done.wait (%p2653_p6), %s258_s7, 2048  }
  0x6c   : > { %1622 = vsyncadd (%p2653_p6), %s258_s7, 4294965248  ;;  %p2654_p7 = scmp.eq.s32.totalorder %s1703_s22, 0 }
  0x6e   : > { %1624 = dma.done.wait (%p2654_p7), [#allocation5], 4096   ;;  %p2655_p4 = pmov %p2654_p7 }
  0x6f   : > { %v2644_v0 = vmov 0.0   ;;  %v328_v1 = vld [vmem:[#allocation6 + $0x8] sm:$0xff]  ;;  %v330_v2 = vld [vmem:[#allocation6 + $0x18] sm:$0xff]  ;;  %v327_v3 = vld [vmem:[#allocation6] sm:$0xff]  ;;  %s1222_s11 = sshll.u32 %s1703_s22, 4  ;;  %p308_p9 = scmp.lt.s32.totalorder %s1703_s22, 1 }
  0x70   : > { %1626 = vsyncadd (%p2655_p4), [#allocation5], 4294963200  ;;  %435 = vmatprep.mubr.f32.mxu0 %v2644_v0  ;;  %v1296_v4 = vpack.c.bf16 %v330_v2, %v328_v1  ;;  %v329_v5 = vld [vmem:[#allocation6 + $0x10] sm:$0xff]  ;;  %v332_v6 = vld [vmem:[#allocation6 + $0x28] sm:$0xff]  ;;  %v2645_v2 = vmov 0.0|0.0   ;;  %p1965_p5 = scmp.lt.s32.totalorder %s1222_s11, 31 }
  0x71   : > { %v334_v7 = vld [vmem:[#allocation6 + $0x38] sm:$0xff]  ;;  %v1298_v8 = vpack.c.bf16 %v329_v5, %v327_v3  ;;  %v331_v10 = vld [vmem:[#allocation6 + $0x20] sm:$0xff]  ;;  %v333_v11 = vld [vmem:[#allocation6 + $0x30] sm:$0xff]  ;;  %1328 = vmatprep.subr.bf16.mxu1 %v2645_v2  ;;  %v361_v3 = vlaneseq  ;;  %s2704_s22 = smov (!%p308_p9, %s1703_s22), 1 }
  0x72   : > { %v1300_v9 = vpack.c.bf16 %v334_v7, %v332_v6  ;;  %v336_v12 = vld [vmem:[#allocation6 + $0x48] sm:$0xff]  ;;  %1297 = vmatprep.subr.bf16.mxu0 %v1296_v4  ;;  %v338_v13 = vld [vmem:[#allocation6 + $0x58] sm:$0xff]  ;;  %v1302_v14 = vpack.c.bf16 %v333_v11, %v331_v10  ;;  %v335_v16 = vld [vmem:[#allocation6 + $0x40] sm:$0xff]  ;;  %s2702_s11 = smov (!%p1965_p5, %s1222_s11), 31  ;;  %s310_s6 = scalar_lea.vmem %s2640_s5, %s2704_s22 }
  0x73   : > { %1299 = vmatpush1.bf16.msra.mxu0 %v1298_v8  ;;  %v1304_v15 = vpack.c.bf16 %v338_v13, %v336_v12  ;;  %v337_v17 = vld [vmem:[#allocation6 + $0x50] sm:$0xff]  ;;  %v340_v18 = vld [vmem:[#allocation6 + $0x68] sm:$0xff]  ;;  %v342_v19 = vld [vmem:[#allocation6 + $0x78] sm:$0xff]  ;;  %v362_v4 = vshrl.u32 %v361_v3, 7  ;;  %s1223_s16 = sshll.u32 %s2702_s11, 3 }
  0x74   : > { %1301 = vmatprep.subr.bf16.mxu0 %v1300_v9  ;;  %v1306_v20 = vpack.c.bf16 %v337_v17, %v335_v16  ;;  %v1308_v21 = vpack.c.bf16 %v342_v19, %v340_v18  ;;  %v339_v22 = vld [vmem:[#allocation6 + $0x60] sm:$0xff]  ;;  %v341_v23 = vld [vmem:[#allocation6 + $0x70] sm:$0xff]  ;;  %v344_v24 = vld [vmem:[#allocation6 + $0x88] sm:$0xff]  ;;  %s2078_s10 = scalar_lea.vmem %s2639_s4, %s1223_s16 }
  0x75   : > { %v346_v25 = vld [vmem:[#allocation6 + $0x98] sm:$0xff]  ;;  %v1310_v26 = vpack.c.bf16 %v341_v23, %v339_v22  ;;  %v343_v28 = vld [vmem:[#allocation6 + $0x80] sm:$0xff]  ;;  %v345_v29 = vld [vmem:[#allocation6 + $0x90] sm:$0xff]  ;;  %v367_v5 = vsub.s32 1, %v362_v4 }
  0x76   : > { %v1312_v27 = vpack.c.bf16 %v346_v25, %v344_v24  ;;  %v348_v30 = vld [vmem:[#allocation6 + $0xa8] sm:$0xff]  ;;  %v350_v31 = vld [vmem:[#allocation6 + $0xb8] sm:$0xff]  ;;  %v1314_v32 = vpack.c.bf16 %v345_v29, %v343_v28  ;;  %v347_v34 = vld [vmem:[#allocation6 + $0xa0] sm:$0xff]  ;;  %v363_v25 = vsub.s32 0, %v362_v4 }
  0x77   : > { %1303 = vmatpush1.bf16.msra.mxu0 %v1302_v14  ;;  %v1316_v33 = vpack.c.bf16 %v350_v31, %v348_v30  ;;  %v349_v35 = vld [vmem:[#allocation6 + $0xb0] sm:$0xff]  ;;  %v352_v36 = vld [vmem:[#allocation6 + $0xc8] sm:$0xff]  ;;  %v354_v37 = vld [vmem:[#allocation6 + $0xd8] sm:$0xff] }
  0x78   : > { %1305 = vmatprep.subr.bf16.mxu0 %v1304_v15  ;;  %v1318_v38 = vpack.c.bf16 %v349_v35, %v347_v34  ;;  %v1320_v39 = vpack.c.bf16 %v354_v37, %v352_v36  ;;  %v351_v40 = vld [vmem:[#allocation6 + $0xc0] sm:$0xff]  ;;  %v353_v41 = vld [vmem:[#allocation6 + $0xd0] sm:$0xff]  ;;  %v356_v42 = vld [vmem:[#allocation6 + $0xe8] sm:$0xff] }
  0x79   : > { %v358_v43 = vld [vmem:[#allocation6 + $0xf8] sm:$0xff]  ;;  %v1322_v44 = vpack.c.bf16 %v353_v41, %v351_v40  ;;  %v355_v46 = vld [vmem:[#allocation6 + $0xe0] sm:$0xff]  ;;  %v357_v47 = vld [vmem:[#allocation6 + $0xf0] sm:$0xff] }
  0x7a   : > { %v1324_v45 = vpack.c.bf16 %v358_v43, %v356_v42  ;;  %v1326_v48 = vpack.c.bf16 %v357_v47, %v355_v46  ;;  %v311_v49 = vld [vmem:[%s1848_s27] sm:$0xff]  ;;  %v312_v50 = vld [vmem:[%s1848_s27 + $0x8] sm:$0xff]  ;;  %v313_v51 = vld [vmem:[%s1848_s27 + $0x10] sm:$0xff] }
  0x7b   : > { %1307 = vmatpush1.bf16.msra.mxu0 %v1306_v20  ;;  %v314_v52 = vld [vmem:[%s1848_s27 + $0x18] sm:$0xff]  ;;  %v315_v53 = vld [vmem:[%s1848_s27 + $0x20] sm:$0xff]  ;;  %v316_v54 = vld [vmem:[%s1848_s27 + $0x28] sm:$0xff] }
  0x7c   : > { %1309 = vmatprep.subr.bf16.mxu0 %v1308_v21  ;;  %v317_v55 = vld [vmem:[%s1848_s27 + $0x30] sm:$0xff]  ;;  %v318_v56 = vld [vmem:[%s1848_s27 + $0x38] sm:$0xff]  ;;  %v319_v57 = vld [vmem:[%s1848_s27 + $0x40] sm:$0xff] }
  0x7d   : > { %v320_v58 = vld [vmem:[%s1848_s27 + $0x48] sm:$0xff]  ;;  %v321_v59 = vld [vmem:[%s1848_s27 + $0x50] sm:$0xff]  ;;  %v322_v60 = vld [vmem:[%s1848_s27 + $0x58] sm:$0xff] }
  0x7e   : > { %v323_v61 = vld [vmem:[%s1848_s27 + $0x60] sm:$0xff]  ;;  %v324_v62 = vld [vmem:[%s1848_s27 + $0x68] sm:$0xff]  ;;  %v325_v63 = vld [vmem:[%s1848_s27 + $0x70] sm:$0xff] }
  0x7f   : > { %1311 = vmatpush1.bf16.msra.mxu0 %v1310_v26  ;;  %v326_v1 = vld [vmem:[%s1848_s27 + $0x78] sm:$0xff]  ;;  %v359_v6 = vld [vmem:[%s2638_s3] sm:$0x3] }
  0x80   : > { %1313 = vmatprep.subr.bf16.mxu0 %v1312_v27  ;;  %v1901_v7 = vrot.slane %v359_v6, %v367_v5 }
  0x83   : > { %1315 = vmatpush1.bf16.msra.mxu0 %v1314_v32  ;;  %v1919_v32 = vrot.slane %v359_v6, %v363_v25 }
  0x84   : > { %1317 = vmatprep.subr.bf16.mxu0 %v1316_v33 }
  0x87   : > { %1319 = vmatpush1.bf16.msra.mxu0 %v1318_v38 }
  0x88   : > { %1321 = vmatprep.subr.bf16.mxu0 %v1320_v39 }
  0x8b   : > { %1323 = vmatpush1.bf16.msra.mxu0 %v1322_v44 }
  0x8c   : > { %1325 = vmatprep.subr.bf16.mxu0 %v1324_v45 }
  0x8f   : > { %1327 = vmatpush1.bf16.msra.mxu0 %v1326_v48 }
  0x92   : > { %436 = vmatmul.mubr.f32.vlgmr.msra.gmra.mrb[0].mxu0 %v311_v49 }
  0x93   : > { %441 = vmatprep.mubr.f32.mxu0 %v2644_v0 }
  0x96   : > { %442 = vmatmul.mubr.f32.gmra.mrb[2].mxu0 %v312_v50 }
  0x97   : > { %447 = vmatprep.mubr.f32.mxu0 %v2644_v0 }
  0x9a   : > { %448 = vmatmul.mubr.f32.gmra.mrb[4].mxu0 %v313_v51 }
  0x9b   : > { %453 = vmatprep.mubr.f32.mxu0 %v2644_v0 }
  0x9e   : > { %454 = vmatmul.mubr.f32.gmra.mrb[6].mxu0 %v314_v52 }
  0x9f   : > { %459 = vmatprep.mubr.f32.mxu0 %v2644_v0 }
  0xa2   : > { %460 = vmatmul.mubr.f32.gmra.mrb[8].mxu0 %v315_v53 }
  0xa3   : > { %465 = vmatprep.mubr.f32.mxu0 %v2644_v0 }
  0xa6   : > { %466 = vmatmul.mubr.f32.gmra.mrb[10].mxu0 %v316_v54 }
  0xa7   : > { %471 = vmatprep.mubr.f32.mxu0 %v2644_v0 }
  0xaa   : > { %472 = vmatmul.mubr.f32.gmra.mrb[12].mxu0 %v317_v55 }
  0xab   : > { %477 = vmatprep.mubr.f32.mxu0 %v2644_v0 }
  0xae   : > { %478 = vmatmul.mubr.f32.gmra.mrb[14].mxu0 %v318_v56 }
  0xaf   : > { %483 = vmatprep.mubr.f32.mxu0 %v2644_v0 }
  0xb2   : > { %484 = vmatmul.mubr.f32.gmra.mrb[16].mxu0 %v319_v57 }
  0xb3   : > { %489 = vmatprep.mubr.f32.mxu0 %v2644_v0 }
  0xb6   : > { %490 = vmatmul.mubr.f32.gmra.mrb[18].mxu0 %v320_v58 }
  0xb7   : > { %495 = vmatprep.mubr.f32.mxu0 %v2644_v0 }
  0xba   : > { %496 = vmatmul.mubr.f32.gmra.mrb[20].mxu0 %v321_v59 }
  0xbb   : > { %501 = vmatprep.mubr.f32.mxu0 %v2644_v0 }
  0xbe   : > { %502 = vmatmul.mubr.f32.gmra.mrb[22].mxu0 %v322_v60 }
  0xbf   : > { %507 = vmatprep.mubr.f32.mxu0 %v2644_v0 }
  0xc2   : > { %508 = vmatmul.mubr.f32.gmra.mrb[24].mxu0 %v323_v61 }
  0xc3   : > { %513 = vmatprep.mubr.f32.mxu0 %v2644_v0 }
  0xc6   : > { %514 = vmatmul.mubr.f32.gmra.mrb[26].mxu0 %v324_v62 }
  0xc7   : > { %519 = vmatprep.mubr.f32.mxu0 %v2644_v0 }
  0xca   : > { %520 = vmatmul.mubr.f32.gmra.mrb[28].mxu0 %v325_v63 }
  0xcb   : > { %525 = vmatprep.mubr.f32.mxu0 %v2644_v0 }
  0xce   : > { %526 = vmatmul.mubr.f32.gmra.mrb[30].mxu0 %v326_v1 }
 0x165   : > { %v437_v8 = vpop.f32.mrb[0].mxu0 }
 0x166   : > { %v439_v9 = vpop.f32.mrb[1].mxu0  ;;  %v1928_v40 = vadd.f32 %v437_v8, %v1919_v32 }
 0x167   : > { %v1904_v10 = vadd.f32 %v439_v9, %v1901_v7 }
 0x168   : > { %v1945_v51 = vmul.f32 %v1928_v40, %v1928_v40 }
 0x169   : > { %v580_v11 = vand.u32 2147483647, %v1904_v10  ;;  %v443_v12 = vpop.f32.mrb[2].mxu0  ;;  %v532_v57 = vmax.f32 %v1904_v10, 0.0  ;;  %vm548_vm0 = vcmp.ne.f32.partialorder %v1904_v10, %v1904_v10 }
 0x16a   : > { %v445_v13 = vpop.f32.mrb[3].mxu0  ;;  %v1935_v45 = vadd.f32 %v443_v12, %v1919_v32 }
 0x16b   : > { %v596_v14 = vsub.f32 0.0, %v580_v11  ;;  %v1908_v15 = vadd.f32 %v445_v13, %v1901_v7 }
 0x16c   : > { %v1956_v58 = vmul.f32 %v1935_v45, %v1935_v45 }
 0x16d   : > { %v612_v16 = vmul.f32 1.442695, %v596_v14  ;;  %v581_v17 = vand.u32 2147483647, %v1908_v15  ;;  %v449_v18 = vpop.f32.mrb[4].mxu0  ;;  %v533_v61 = vmax.f32 %v1908_v15, 0.0  ;;  %vm549_vm2 = vcmp.ne.f32.partialorder %v1908_v15, %v1908_v15 }
 0x16e   : > { %v451_v19 = vpop.f32.mrb[5].mxu0  ;;  %v1940_v47 = vadd.f32 %v449_v18, %v1919_v32 }
 0x16f   : > { %1415 = vpow2.f32 %v612_v16  ;;  %v597_v20 = vsub.f32 0.0, %v581_v17  ;;  %v1912_v21 = vadd.f32 %v451_v19, %v1901_v7 }
 0x170   : > { %v1972_v62 = vmul.f32 %v1940_v47, %v1940_v47 }
 0x171   : > { %v614_v22 = vmul.f32 1.442695, %v597_v20  ;;  %v582_v23 = vand.u32 2147483647, %v1912_v21  ;;  %v455_v24 = vpop.f32.mrb[6].mxu0  ;;  %v534_v6 = vmax.f32 %v1912_v21, 0.0  ;;  %vm550_vm4 = vcmp.ne.f32.partialorder %v1912_v21, %v1912_v21 }
 0x172   : > { %v457_v26 = vpop.f32.mrb[7].mxu0  ;;  %v1959_v59 = vadd.f32 %v455_v24, %v1919_v32 }
 0x173   : > { %1417 = vpow2.f32 %v614_v22  ;;  %v598_v27 = vsub.f32 0.0, %v582_v23  ;;  %v1916_v28 = vadd.f32 %v457_v26, %v1901_v7 }
 0x174   : > { %v1991_v14 = vmul.f32 %v1959_v59, %v1959_v59 }
 0x175   : > { %v616_v29 = vmul.f32 1.442695, %v598_v27  ;;  %v583_v30 = vand.u32 2147483647, %v1916_v28  ;;  %v461_v31 = vpop.f32.mrb[8].mxu0  ;;  %v535_v16 = vmax.f32 %v1916_v28, 0.0  ;;  %vm551_vm5 = vcmp.ne.f32.partialorder %v1916_v28, %v1916_v28 }
 0x176   : > { %v463_v33 = vpop.f32.mrb[9].mxu0  ;;  %v1975_v63 = vadd.f32 %v461_v31, %v1919_v32 }
 0x177   : > { %1419 = vpow2.f32 %v616_v29  ;;  %v599_v34 = vsub.f32 0.0, %v583_v30  ;;  %v1922_v35 = vadd.f32 %v463_v33, %v1901_v7 }
 0x178   : > { %v2008_v20 = vmul.f32 %v1975_v63, %v1975_v63 }
 0x179   : > { %v1924_v36 = vpop.eup %1415  ;;  %v618_v37 = vmul.f32 1.442695, %v599_v34  ;;  %v584_v38 = vand.u32 2147483647, %v1922_v35  ;;  %v467_v39 = vpop.f32.mrb[10].mxu0  ;;  %v536_v22 = vmax.f32 %v1922_v35, 0.0  ;;  %vm552_vm7 = vcmp.ne.f32.partialorder %v1922_v35, %v1922_v35 }
 0x17a   : > { %v644_v41 = vadd.f32 1.0, %v1924_v36  ;;  %v469_v42 = vpop.f32.mrb[11].mxu0  ;;  %v647_v54 = vmul.f32 -0.5, %v1924_v36  ;;  %v650_v4 = vand.u32 2147483647, %v1924_v36  ;;  %v1995_v17 = vadd.f32 %v467_v39, %v1919_v32 }
 0x17b   : > { %1421 = vpow2.f32 %v618_v37  ;;  %v600_v43 = vsub.f32 0.0, %v584_v38  ;;  %v1932_v44 = vadd.f32 %v469_v42, %v1901_v7 }
 0x17c   : > { %1423 = vlog2.f32 %v644_v41  ;;  %v648_v11 = vadd.f32 1.0, %v647_v54  ;;  %vm2013_vm1 = vcmp.lt.f32.partialorder %v650_v4, 0.0004427343  ;;  %v2025_v39 = vmul.f32 %v1995_v17, %v1995_v17 }
 0x17d   : > { %v1937_v46 = vpop.eup %1417  ;;  %v620_v48 = vmul.f32 1.442695, %v600_v43  ;;  %v585_v49 = vand.u32 2147483647, %v1932_v44  ;;  %v473_v50 = vpop.f32.mrb[12].mxu0  ;;  %v537_v41 = vmax.f32 %v1932_v44, 0.0  ;;  %vm553_vm9 = vcmp.ne.f32.partialorder %v1932_v44, %v1932_v44 }
 0x17e   : > { %v653_v52 = vadd.f32 1.0, %v1937_v46  ;;  %v475_v53 = vpop.f32.mrb[13].mxu0  ;;  %v656_v5 = vmul.f32 -0.5, %v1937_v46  ;;  %v659_v19 = vand.u32 2147483647, %v1937_v46  ;;  %v649_v34 = vmul.f32 %v1924_v36, %v648_v11 }
 0x17f   : > { %1425 = vpow2.f32 %v620_v48  ;;  %v601_v55 = vsub.f32 0.0, %v585_v49  ;;  %v1951_v56 = vadd.f32 %v475_v53, %v1901_v7  ;;  %v2029_v42 = vadd.f32 %v473_v50, %v1919_v32 }
 0x180   : > { %1427 = vlog2.f32 %v653_v52  ;;  %v657_v27 = vadd.f32 1.0, %v656_v5  ;;  %vm2035_vm3 = vcmp.lt.f32.partialorder %v659_v19, 0.0004427343 }
 0x181   : > { %v1961_v60 = vpop.eup %1419  ;;  %v622_v1 = vmul.f32 1.442695, %v601_v55  ;;  %v1977_v3 = vpop.f32.mrb[14].mxu0  ;;  %v586_v12 = vand.u32 2147483647, %v1951_v56  ;;  %v820_v55 = vld [vmem:[%s1855_s26] sm:$0xff]  ;;  %v2062_v19 = vmul.f32 %v2029_v42, %v2029_v42  ;;  %vm554_vm12 = vcmp.ne.f32.partialorder %v1951_v56, %v1951_v56 }
 0x182   : > { %v662_v8 = vadd.f32 1.0, %v1961_v60  ;;  %v481_v9 = vpop.f32.mrb[15].mxu0  ;;  %v665_v29 = vmul.f32 -0.5, %v1961_v60 }
 0x183   : > { %1429 = vpow2.f32 %v622_v1  ;;  %v1987_v13 = vadd.f32 %v481_v9, %v1901_v7  ;;  %v602_v23 = vsub.f32 0.0, %v586_v12  ;;  %v658_v1 = vmul.f32 %v1937_v46, %v657_v27 }
 0x184   : > { %1431 = vlog2.f32 %v662_v8  ;;  %v666_v9 = vadd.f32 1.0, %v665_v29  ;;  %v2071_v27 = vadd.f32 %v1977_v3, %v1919_v32 }
 0x185   : > { %v1997_v18 = vpop.eup %1421  ;;  %v2011_v24 = vpop.f32.mrb[16].mxu0  ;;  %v624_v37 = vmul.f32 1.442695, %v602_v23  ;;  %v587_v38 = vand.u32 2147483647, %v1987_v13  ;;  %vm555_vm13 = vcmp.ne.f32.partialorder %v1987_v13, %v1987_v13 }
 0x186   : > { %v1424_v25 = vpop.eup %1423  ;;  %v671_v30 = vadd.f32 1.0, %v1997_v18  ;;  %v487_v31 = vpop.f32.mrb[17].mxu0  ;;  %v674_v50 = vmul.f32 -0.5, %v1997_v18  ;;  %v667_v48 = vmul.f32 %v1961_v60, %v666_v9 }
 0x187   : > { %v646_v33 = vmul.f32 0.6931472, %v1424_v25  ;;  %v603_v49 = vsub.f32 0.0, %v587_v38  ;;  %v2051_v12 = vadd.f32 %v487_v31, %v1901_v7  ;;  %v821_v31 = vld [vmem:[%s1855_s26 + $0x8] sm:$0xff] }
 0x188   : > { %1433 = vlog2.f32 %v671_v30 }
 0x189   : > { %v2031_v43 = vpop.eup %1425  ;;  %v652_v36 = vsel %vm2013_vm1, %v649_v34, %v646_v33  ;;  %1435 = vpow2.f32 %v624_v37  ;;  %v2039_v52 = vpop.f32.mrb[18].mxu0  ;;  %v626_v11 = vmul.f32 1.442695, %v603_v49  ;;  %v675_v33 = vadd.f32 1.0, %v674_v50 }
 0x18a   : > { %v1428_v53 = vpop.eup %1427  ;;  %v788_v54 = vadd.f32 %v652_v36, %v532_v57  ;;  %v680_v4 = vadd.f32 1.0, %v2031_v43  ;;  %v2045_v5 = vpop.f32.mrb[19].mxu0  ;;  %v668_v57 = vand.u32 2147483647, %v1961_v60  ;;  %v683_v34 = vmul.f32 -0.5, %v2031_v43 }
 0x18b   : > { %v655_v8 = vmul.f32 0.6931472, %v1428_v53  ;;  %v588_v49 = vand.u32 2147483647, %v2051_v12  ;;  %v677_v53 = vand.u32 2147483647, %v1997_v18 }
 0x18c   : > { %v2057_v46 = vsel %vm548_vm0, %v1904_v10, %v788_v54  ;;  %1437 = vlog2.f32 %v680_v4  ;;  %vm669_vm6 = vcmp.lt.f32.partialorder %v668_v57, 0.0004427343  ;;  %v538_v60 = vmax.f32 %v1951_v56, 0.0 }
 0x18d   : > { %v2064_v23 = vpop.eup %1429  ;;  %v836_v25 = vmul.f32 %v820_v55, %v2057_v46  ;;  %v661_v26 = vsel %vm2035_vm3, %v658_v1, %v655_v8  ;;  %1439 = vpow2.f32 %v626_v11  ;;  %v2073_v10 = vpop.f32.mrb[20].mxu0  ;;  %v604_v55 = vsub.f32 0.0, %v588_v49 }
 0x18e   : > { %v1432_v29 = vpop.eup %1431  ;;  %v789_v30 = vadd.f32 %v661_v26, %v533_v61  ;;  %v689_v3 = vadd.f32 1.0, %v2064_v23  ;;  %v2085_v37 = vpop.f32.mrb[21].mxu0  ;;  %v676_v8 = vmul.f32 %v1997_v18, %v675_v33  ;;  %v684_v9 = vadd.f32 1.0, %v683_v34 }
 0x18f   : > { %v852_v38 = vadd.f32 %v836_v25, %v1928_v40  ;;  %v664_v36 = vmul.f32 0.6931472, %v1432_v29  ;;  %v2110_v11 = vmul.f32 %v2071_v27, %v2071_v27  ;;  %vm678_vm8 = vcmp.lt.f32.partialorder %v677_v53, 0.0004427343 }
 0x190   : > { %v2096_v61 = vsel %vm549_vm2, %v1908_v15, %v789_v30  ;;  %1441 = vlog2.f32 %v689_v3  ;;  %v822_v15 = vld [vmem:[%s1855_s26 + $0x10] sm:$0xff]  ;;  %v628_v30 = vmul.f32 1.442695, %v604_v55  ;;  %v2132_v3 = vadd.f32 %v2011_v24, %v1919_v32 }
 0x191   : > { %868 = vst [vmem:[%s2078_s10] sm:$0xff] %v852_v38  ;;  %v837_v40 = vmul.f32 %v821_v31, %v2096_v61  ;;  %v670_v54 = vsel %vm669_vm6, %v667_v48, %v664_v36  ;;  %v2102_v1 = vpop.f32.mrb[22].mxu0  ;;  %v686_v31 = vand.u32 2147483647, %v2031_v43  ;;  %v823_v48 = vld [vmem:[%s1855_s26 + $0x18] sm:$0xff]  ;;  %v685_v49 = vmul.f32 %v2031_v43, %v684_v9 }
 0x192   : > { %v1434_v50 = vpop.eup %1433  ;;  %v790_v4 = vadd.f32 %v670_v54, %v534_v6  ;;  %v2112_v57 = vpop.f32.mrb[23].mxu0  ;;  %v692_v6 = vmul.f32 -0.5, %v2064_v23  ;;  %1443 = vpow2.f32 %v628_v30  ;;  %v2142_v53 = vadd.f32 %v2045_v5, %v1901_v7 }
 0x193   : > { %v2114_v25 = vpop.eup %1435  ;;  %v853_v26 = vadd.f32 %v837_v40, %v1935_v45  ;;  %v673_v29 = vmul.f32 0.6931472, %v1434_v50  ;;  %v695_v50 = vand.u32 2147483647, %v2064_v23  ;;  %vm687_vm10 = vcmp.lt.f32.partialorder %v686_v31, 0.0004427343 }
 0x194   : > { %v2124_v18 = vsel %vm550_vm4, %v1912_v21, %v790_v4  ;;  %v698_v33 = vadd.f32 1.0, %v2114_v25  ;;  %v701_v5 = vmul.f32 -0.5, %v2114_v25  ;;  %v2165_v9 = vmul.f32 %v2132_v3, %v2132_v3 }
 0x195   : > { %869 = vst [vmem:[%s2078_s10 + $0x8] sm:$0xff] %v853_v26  ;;  %v838_v45 = vmul.f32 %v822_v15, %v2124_v18  ;;  %v679_v34 = vsel %vm678_vm8, %v676_v8, %v673_v29  ;;  %v2134_v38 = vpop.f32.mrb[24].mxu0  ;;  %v539_v8 = vmax.f32 %v1987_v13, 0.0  ;;  %v2174_v30 = vadd.f32 %v2039_v52, %v1919_v32 }
 0x196   : > { %v1438_v36 = vpop.eup %1437  ;;  %v791_v21 = vadd.f32 %v679_v34, %v535_v16  ;;  %1445 = vlog2.f32 %v698_v33  ;;  %v2144_v40 = vpop.f32.mrb[25].mxu0  ;;  %v693_v16 = vadd.f32 1.0, %v692_v6  ;;  %v824_v6 = vld [vmem:[%s1855_s26 + $0x20] sm:$0xff]  ;;  %v589_v31 = vand.u32 2147483647, %v2142_v53 }
 0x197   : > { %v2146_v24 = vpop.eup %1439  ;;  %v854_v54 = vadd.f32 %v838_v45, %v1940_v47  ;;  %v682_v55 = vmul.f32 0.6931472, %v1438_v36  ;;  %vm696_vm11 = vcmp.lt.f32.partialorder %v695_v50, 0.0004427343  ;;  %v2187_v52 = vadd.f32 %v2085_v37, %v1901_v7 }
 0x198   : > { %v2156_v43 = vsel %vm551_vm5, %v1916_v28, %v791_v21  ;;  %v707_v4 = vadd.f32 1.0, %v2146_v24  ;;  %v694_v36 = vmul.f32 %v2064_v23, %v693_v16  ;;  %v702_v21 = vadd.f32 1.0, %v701_v5  ;;  %v825_v16 = vld [vmem:[%s1855_s26 + $0x28] sm:$0xff] }
 0x199   : > { %870 = vst [vmem:[%s2078_s10 + $0x10] sm:$0xff] %v854_v54  ;;  %v839_v47 = vmul.f32 %v823_v48, %v2156_v43  ;;  %v688_v15 = vsel %vm687_vm10, %v685_v49, %v682_v55  ;;  %v2167_v26 = vpop.f32.mrb[26].mxu0  ;;  %v605_v48 = vsub.f32 0.0, %v589_v31  ;;  %v710_v23 = vmul.f32 -0.5, %v2146_v24 }
 0x19a   : > { %v1442_v28 = vpop.eup %1441  ;;  %v792_v29 = vadd.f32 %v688_v15, %v536_v22  ;;  %1447 = vlog2.f32 %v707_v4  ;;  %v517_v33 = vpop.f32.mrb[27].mxu0  ;;  %v540_v54 = vmax.f32 %v2051_v12, 0.0  ;;  %v704_v37 = vand.u32 2147483647, %v2114_v25 }
 0x19b   : > { %v855_v45 = vadd.f32 %v839_v47, %v1959_v59  ;;  %v691_v34 = vmul.f32 0.6931472, %v1442_v28  ;;  %v2203_v50 = vmul.f32 %v2174_v30, %v2174_v30  ;;  %v630_v5 = vmul.f32 1.442695, %v605_v48 }
 0x19c   : > { %v2183_v22 = vsel %vm552_vm7, %v1922_v35, %v792_v29  ;;  %v2207_v47 = vpop.eup %1443  ;;  %v713_v28 = vand.u32 2147483647, %v2146_v24  ;;  %v590_v29 = vand.u32 2147483647, %v2187_v52  ;;  %v711_v48 = vadd.f32 1.0, %v710_v23 }
 0x19d   : > { %871 = vst [vmem:[%s2078_s10 + $0x18] sm:$0xff] %v855_v45  ;;  %v840_v59 = vmul.f32 %v824_v6, %v2183_v22  ;;  %v697_v49 = vsel %vm696_vm11, %v694_v36, %v691_v34  ;;  %v2195_v55 = vpop.f32.mrb[28].mxu0  ;;  %v703_v45 = vmul.f32 %v2114_v25, %v702_v21  ;;  %v716_v34 = vadd.f32 1.0, %v2207_v47 }
 0x19e   : > { %v793_v35 = vadd.f32 %v697_v49, %v537_v41  ;;  %v2205_v4 = vpop.f32.mrb[29].mxu0  ;;  %v2213_v41 = vadd.f32 %v2073_v10, %v1919_v32  ;;  %1449 = vpow2.f32 %v630_v5  ;;  %v2236_v25 = vmul.f32 %v2124_v18, %v2124_v18 }
 0x19f   : > { %v856_v15 = vadd.f32 %v840_v59, %v1975_v63  ;;  %v2226_v63 = vadd.f32 %v2112_v57, %v1901_v7  ;;  %vm705_vm14 = vcmp.lt.f32.partialorder %v704_v37, 0.0004427343  ;;  %1451 = vlog2.f32 %v716_v34 }
 0x1a0   : > { %v1446_v6 = vpop.eup %1445  ;;  %v2220_v31 = vsel %vm553_vm9, %v1932_v44, %v793_v35  ;;  %v606_v57 = vsub.f32 0.0, %v590_v29  ;;  %vm2241_vm15 = vcmp.lt.f32.partialorder %v713_v28, 0.0004427343  ;;  %v719_v37 = vmul.f32 -0.5, %v2207_v47 }
 0x1a1   : > { %872 = vst [vmem:[%s2078_s10 + $0x20] sm:$0xff] %v856_v15  ;;  %v841_v10 = vmul.f32 %v825_v16, %v2220_v31  ;;  %v700_v36 = vmul.f32 0.6931472, %v1446_v6  ;;  %v2232_v44 = vpop.f32.mrb[30].mxu0  ;;  %v826_v15 = vld [vmem:[%s1855_s26 + $0x30] sm:$0xff]  ;;  %v712_v28 = vmul.f32 %v2146_v24, %v711_v48  ;;  %v2259_v34 = vadd.f32 %v2144_v40, %v1901_v7 }
 0x1a2   : > { %v2238_v21 = vpop.f32.mrb[31].mxu0  ;;  %v632_v6 = vmul.f32 1.442695, %v606_v57  ;;  %v591_v29 = vand.u32 2147483647, %v2226_v63  ;;  %v2272_v24 = vmul.f32 %v2156_v43, %v2156_v43  ;;  %v827_v57 = vld [vmem:[%s1855_s26 + $0x38] sm:$0xff]  ;;  %vm556_vm0 = vcmp.ne.f32.partialorder %v2051_v12, %v2051_v12 }
 0x1a3   : > { %v857_v59 = vadd.f32 %v841_v10, %v1995_v17  ;;  %v706_v49 = vsel %vm705_vm14, %v703_v45, %v700_v36  ;;  %v2255_v45 = vadd.f32 %v2102_v1, %v1919_v32  ;;  %v2268_v36 = vadd.f32 %v517_v33, %v1901_v7 }
 0x1a4   : > { %v1448_v16 = vpop.eup %1447  ;;  %v794_v5 = vadd.f32 %v706_v49, %v538_v60  ;;  %1453 = vpow2.f32 %v632_v6  ;;  %v607_v10 = vsub.f32 0.0, %v591_v29  ;;  %v722_v48 = vand.u32 2147483647, %v2207_v47 }
 0x1a5   : > { %873 = vst [vmem:[%s2078_s10 + $0x28] sm:$0xff] %v857_v59  ;;  %v709_v17 = vmul.f32 0.6931472, %v1448_v16  ;;  %v720_v59 = vadd.f32 1.0, %v719_v37  ;;  %v2283_v33 = vmul.f32 %v2213_v41, %v2213_v41  ;;  %v2287_v16 = vmul.f32 %v2183_v22, %v2183_v22 }
 0x1a6   : > { %v2265_v60 = vsel %vm554_vm12, %v1951_v56, %v794_v5  ;;  %v634_v49 = vmul.f32 1.442695, %v607_v10  ;;  %v2302_v37 = vmul.f32 %v2255_v45, %v2255_v45  ;;  %v2307_v29 = vmul.f32 %v2220_v31, %v2220_v31 }
 0x1a7   : > { %v842_v1 = vmul.f32 %v826_v15, %v2265_v60  ;;  %v715_v40 = vsel %vm2241_vm15, %v712_v28, %v709_v17  ;;  %vm2311_vm1 = vcmp.lt.f32.partialorder %v722_v48, 0.0004427343  ;;  %vm557_vm3 = vcmp.ne.f32.partialorder %v2142_v53, %v2142_v53 }
 0x1a8   : > { %v795_v56 = vadd.f32 %v715_v40, %v539_v8  ;;  %v592_v8 = vand.u32 2147483647, %v2259_v34  ;;  %1455 = vpow2.f32 %v634_v49  ;;  %v1450_v6 = vpop.eup %1449  ;;  %vm558_vm4 = vcmp.ne.f32.partialorder %v2187_v52, %v2187_v52 }
 0x1a9   : > { %v858_v35 = vadd.f32 %v842_v1, %v2029_v42  ;;  %v593_v42 = vand.u32 2147483647, %v2268_v36  ;;  %v1452_v10 = vpop.eup %1451  ;;  %v721_v1 = vmul.f32 %v2207_v47, %v720_v59  ;;  %v725_v40 = vadd.f32 1.0, %v1450_v6 }
 0x1aa   : > { %v2298_v15 = vsel %vm555_vm13, %v1987_v13, %v795_v56  ;;  %v608_v13 = vsub.f32 0.0, %v592_v8  ;;  %v2318_v56 = vadd.f32 %v2134_v38, %v1919_v32  ;;  %v718_v0 = vmul.f32 0.6931472, %v1452_v10 }
 0x1ab   : > { %874 = vst [vmem:[%s2078_s10 + $0x30] sm:$0xff] %v858_v35  ;;  %v843_v17 = vmul.f32 %v827_v57, %v2298_v15  ;;  %v609_v49 = vsub.f32 0.0, %v593_v42  ;;  %v728_v57 = vmul.f32 -0.5, %v1450_v6  ;;  %1457 = vlog2.f32 %v725_v40 }
 0x1ac   : > { %v636_v48 = vmul.f32 1.442695, %v608_v13  ;;  %v2324_v8 = vadd.f32 %v2167_v26, %v1919_v32  ;;  %v2328_v59 = vmul.f32 %v2265_v60, %v2265_v60  ;;  %v724_v38 = vsel %vm2311_vm1, %v721_v1, %v718_v0 }
 0x1ad   : > { %v859_v35 = vadd.f32 %v843_v17, %v2071_v27  ;;  %v638_v47 = vmul.f32 1.442695, %v609_v49  ;;  %v2335_v27 = vadd.f32 %v2205_v4, %v1901_v7  ;;  %v796_v26 = vadd.f32 %v724_v38, %v540_v54  ;;  %v828_v17 = vld [vmem:[%s1855_s26 + $0x40] sm:$0xff] }
 0x1ae   : > { %1459 = vpow2.f32 %v636_v48  ;;  %v2337_v42 = vpop.eup %1453  ;;  %v731_v13 = vand.u32 2147483647, %v1450_v6  ;;  %v2344_v10 = vadd.f32 %v2195_v55, %v1919_v32  ;;  %v729_v40 = vadd.f32 1.0, %v728_v57 }
 0x1af   : > { %875 = vst [vmem:[%s2078_s10 + $0x38] sm:$0xff] %v859_v35  ;;  %1461 = vpow2.f32 %v638_v47  ;;  %v734_v0 = vadd.f32 1.0, %v2337_v42  ;;  %v2349_v28 = vmul.f32 %v2318_v56, %v2318_v56  ;;  %v2356_v54 = vsel %vm556_vm0, %v2051_v12, %v796_v26 }
 0x1b0   : > { %v2360_v1 = vmul.f32 %v2324_v8, %v2324_v8  ;;  %v594_v55 = vand.u32 2147483647, %v2335_v27  ;;  %v2365_v49 = vadd.f32 %v2238_v21, %v1901_v7  ;;  %v2369_v35 = vmul.f32 %v2298_v15, %v2298_v15 }
 0x1b1   : > { %v844_v57 = vmul.f32 %v828_v17, %v2356_v54  ;;  %1463 = vlog2.f32 %v734_v0  ;;  %vm2375_vm2 = vcmp.lt.f32.partialorder %v731_v13, 0.0004427343  ;;  %v737_v38 = vmul.f32 -0.5, %v2337_v42 }
 0x1b2   : > { %2665 = vst [vmem:[#allocation10_spill] sm:$0xff] %v2360_v1  ;;  %v2373_v48 = vpop.eup %1455  ;;  %v2382_v7 = vmul.f32 %v2344_v10, %v2344_v10  ;;  %v610_v21 = vsub.f32 0.0, %v594_v55  ;;  %v730_v17 = vmul.f32 %v1450_v6, %v729_v40  ;;  %v2390_v13 = vadd.f32 %v2232_v44, %v1919_v32 }
 0x1b3   : > { %v860_v26 = vadd.f32 %v844_v57, %v2132_v3  ;;  %v743_v0 = vadd.f32 1.0, %v2373_v48  ;;  %v740_v12 = vand.u32 2147483647, %v2337_v42  ;;  %v595_v2 = vand.u32 2147483647, %v2365_v49 }
 0x1b4   : > { %2668 = vst [vmem:[#allocation11_spill] sm:$0xff] %v2382_v7  ;;  %2669 = vst [vmem:[#allocation12_spill] sm:$0xff] %v2390_v13  ;;  %v640_v4 = vmul.f32 1.442695, %v610_v21  ;;  %v884_v55 = vmul.f32 %v2057_v46, %v2057_v46  ;;  %v885_v6 = vmul.f32 %v2096_v61, %v2096_v61  ;;  %v2402_v40 = vadd.f32 %v1972_v62, %v2236_v25 }
 0x1b5   : > { %876 = vst [vmem:[%s2078_s10 + $0x40] sm:$0xff] %v860_v26  ;;  %1465 = vlog2.f32 %v743_v0  ;;  %v1458_v32 = vpop.eup %1457  ;;  %v738_v44 = vadd.f32 1.0, %v737_v38  ;;  %v611_v57 = vsub.f32 0.0, %v595_v2  ;;  %v746_v26 = vmul.f32 -0.5, %v2373_v48 }
 0x1b6   : > { %1467 = vpow2.f32 %v640_v4  ;;  %v916_v21 = vadd.f32 %v1945_v51, %v884_v55  ;;  %v727_v23 = vmul.f32 0.6931472, %v1458_v32  ;;  %v2407_v0 = vadd.f32 %v1956_v58, %v885_v6  ;;  %v829_v32 = vld [vmem:[%s1855_s26 + $0x48] sm:$0xff] }
 0x1b7   : > { %1469 = vlog2.f32 %v2057_v46  ;;  %v2412_v62 = vmul.f32 %v2356_v54, %v2356_v54  ;;  %v2418_v51 = vmul.f32 %v2390_v13, %v2390_v13  ;;  %v642_v25 = vmul.f32 1.442695, %v611_v57 }
 0x1b8   : > { %v1460_v5 = vpop.eup %1459  ;;  %v733_v58 = vsel %vm2375_vm2, %v730_v17, %v727_v23  ;;  %v749_v4 = vand.u32 2147483647, %v2373_v48  ;;  %v2671_v55 = vmax.f32 %v2142_v53, 0.0  ;;  %vm2426_vm5 = vcmp.lt.f32.partialorder %v740_v12, 0.0004427343 }
 0x1b9   : > { %v1462_v3 = vpop.eup %1461  ;;  %v752_v2 = vadd.f32 1.0, %v1460_v5  ;;  %2670 = vst [vmem:[#allocation13_spill] sm:$0xff] %v2418_v51  ;;  %v755_v46 = vmul.f32 -0.5, %v1460_v5  ;;  %v739_v57 = vmul.f32 %v2337_v42, %v738_v44  ;;  %v747_v47 = vadd.f32 1.0, %v746_v26 }
 0x1ba   : > { %v761_v38 = vadd.f32 1.0, %v1462_v3  ;;  %v797_v6 = vadd.f32 %v733_v58, %v2671_v55  ;;  %v764_v23 = vmul.f32 -0.5, %v1462_v3  ;;  %vm559_vm6 = vcmp.ne.f32.partialorder %v2226_v63, %v2226_v63 }
 0x1bb   : > { %1471 = vlog2.f32 %v752_v2  ;;  %v1464_v51 = vpop.eup %1463  ;;  %v758_v2 = vand.u32 2147483647, %v1460_v5  ;;  %vm2441_vm7 = vcmp.lt.f32.partialorder %v749_v4, 0.0004427343  ;;  %v756_v44 = vadd.f32 1.0, %v755_v46 }
 0x1bc   : > { %1473 = vlog2.f32 %v761_v38  ;;  %v2436_v17 = vsel %vm557_vm3, %v2142_v53, %v797_v6  ;;  %v736_v12 = vmul.f32 0.6931472, %v1464_v51  ;;  %v767_v26 = vand.u32 2147483647, %v1462_v3 }
 0x1bd   : > { %1475 = vpow2.f32 %v642_v25  ;;  %v845_v58 = vmul.f32 %v829_v32, %v2436_v17  ;;  %v1224_v53 = vadd.f32 -1.0, %v916_v21  ;;  %v919_v51 = vadd.f32 %v1991_v14, %v2272_v24  ;;  %v830_v32 = vld [vmem:[%s1855_s26 + $0x50] sm:$0xff] }
 0x1be   : > { %v742_v38 = vsel %vm2426_vm5, %v739_v57, %v736_v12  ;;  %1477 = vlog2.f32 %v2096_v61  ;;  %v2676_v4 = vmax.f32 %v2187_v52, 0.0  ;;  %v748_v46 = vmul.f32 %v2373_v48, %v747_v47 }
 0x1bf   : > { %v1466_v55 = vpop.eup %1465  ;;  %v861_v25 = vadd.f32 %v845_v58, %v2174_v30  ;;  %v765_v13 = vadd.f32 1.0, %v764_v23  ;;  %vm2457_vm8 = vcmp.lt.f32.partialorder %v758_v2, 0.0004427343  ;;  %1479 = vlog2.f32 %v2124_v18 }
 0x1c0   : > { %v798_v6 = vadd.f32 %v742_v38, %v2676_v4  ;;  %v2455_v1 = vpop.eup %1467  ;;  %v745_v7 = vmul.f32 0.6931472, %v1466_v55  ;;  %v2464_v14 = vadd.f32 %v2008_v20, %v2287_v16  ;;  %vm560_vm9 = vcmp.ne.f32.partialorder %v2259_v34, %v2259_v34 }
 0x1c1   : > { %v1470_v61 = vpop.eup %1469  ;;  %877 = vst [vmem:[%s2078_s10 + $0x48] sm:$0xff] %v861_v25  ;;  %v757_v24 = vmul.f32 %v1460_v5, %v756_v44  ;;  %vm2475_vm10 = vcmp.lt.f32.partialorder %v767_v26, 0.0004427343  ;;  %v770_v18 = vadd.f32 1.0, %v2455_v1  ;;  %vm561_vm11 = vcmp.ne.f32.partialorder %v2268_v36, %v2268_v36  ;;  %v831_v5 = vld [vmem:[%s1855_s26 + $0x58] sm:$0xff] }
 0x1c2   : > { %v2471_v30 = vsel %vm558_vm4, %v2187_v52, %v798_v6  ;;  %v751_v16 = vsel %vm2441_vm7, %v748_v46, %v745_v7  ;;  %v948_v52 = vmul.f32 0.5, %v1224_v53  ;;  %v965_v57 = vmul.f32 0.6931472, %v1470_v61 }
 0x1c3   : > { %v846_v20 = vmul.f32 %v830_v32, %v2471_v30  ;;  %v2681_v47 = vmax.f32 %v2226_v63, 0.0  ;;  %v766_v12 = vmul.f32 %v1462_v3, %v765_v13  ;;  %1481 = vlog2.f32 %v770_v18 }
 0x1c4   : > { %v773_v2 = vmul.f32 -0.5, %v2455_v1  ;;  %v1225_v42 = vadd.f32 -1.0, %v2407_v0  ;;  %v996_v26 = vsub.f32 %v948_v52, %v965_v57  ;;  %v1226_v38 = vadd.f32 -1.0, %v2402_v40 }
 0x1c5   : > { %v799_v23 = vadd.f32 %v751_v16, %v2681_v47  ;;  %v1472_v58 = vpop.eup %1471  ;;  %v862_v44 = vadd.f32 %v846_v20, %v2213_v41  ;;  %v776_v13 = vand.u32 2147483647, %v2455_v1  ;;  %1483 = vlog2.f32 %v2156_v43  ;;  %v833_v16 = vld [vmem:[%s1855_s26 + $0x68] sm:$0xff] }
 0x1c6   : > { %v1474_v55 = vpop.eup %1473  ;;  %v754_v25 = vmul.f32 0.6931472, %v1472_v58  ;;  %v1227_v0 = vadd.f32 -1.0, %v919_v51  ;;  %v921_v4 = vadd.f32 %v2025_v39, %v2307_v29  ;;  %v774_v32 = vadd.f32 1.0, %v773_v2  ;;  %v832_v51 = vld [vmem:[%s1855_s26 + $0x60] sm:$0xff] }
 0x1c7   : > { %v2496_v53 = vsel %vm559_vm6, %v2226_v63, %v799_v23  ;;  %v2500_v3 = vpop.eup %1475  ;;  %878 = vst [vmem:[%s2078_s10 + $0x50] sm:$0xff] %v862_v44  ;;  %v763_v40 = vmul.f32 0.6931472, %v1474_v55  ;;  %v893_v63 = vmul.f32 %v2436_v17, %v2436_v17  ;;  %v2682_v61 = vmax.f32 %v2259_v34, 0.0 }
 0x1c8   : > { %v847_v41 = vmul.f32 %v831_v5, %v2496_v53  ;;  %v760_v6 = vsel %vm2457_vm8, %v757_v24, %v754_v25  ;;  %v779_v43 = vadd.f32 1.0, %v2500_v3  ;;  %v1478_v46 = vpop.eup %1477  ;;  %v949_v29 = vmul.f32 0.5, %v1225_v42 }
 0x1c9   : > { %v800_v18 = vadd.f32 %v760_v6, %v2682_v61  ;;  %v769_v39 = vsel %vm2475_vm10, %v766_v12, %v763_v40  ;;  %v894_v20 = vmul.f32 %v2471_v30, %v2471_v30  ;;  %v2683_v21 = vmax.f32 %v2268_v36, 0.0 }
 0x1ca   : > { %v863_v7 = vadd.f32 %v847_v41, %v2255_v45  ;;  %vm2522_vm12 = vcmp.lt.f32.partialorder %v776_v13, 0.0004427343  ;;  %1485 = vlog2.f32 %v779_v43  ;;  %v1480_v45 = vpop.eup %1479  ;;  %vm562_vm13 = vcmp.ne.f32.partialorder %v2335_v27, %v2335_v27 }
 0x1cb   : > { %v801_v24 = vadd.f32 %v769_v39, %v2683_v21  ;;  %v2531_v48 = vsel %vm560_vm9, %v2259_v34, %v800_v18  ;;  %v967_v57 = vmul.f32 0.6931472, %v1478_v46  ;;  %v950_v47 = vmul.f32 0.5, %v1226_v38 }
 0x1cc   : > { %879 = vst [vmem:[%s2078_s10 + $0x58] sm:$0xff] %v863_v7  ;;  %v951_v23 = vmul.f32 0.5, %v1227_v0  ;;  %v848_v5 = vmul.f32 %v832_v51, %v2531_v48  ;;  %v775_v2 = vmul.f32 %v2455_v1, %v774_v32  ;;  %v782_v34 = vmul.f32 -0.5, %v2500_v3 }
 0x1cd   : > { %v2540_v12 = vsel %vm561_vm11, %v2268_v36, %v801_v24  ;;  %v895_v58 = vmul.f32 %v2496_v53, %v2496_v53  ;;  %v997_v42 = vsub.f32 %v949_v29, %v967_v57  ;;  %v969_v38 = vmul.f32 0.6931472, %v1480_v45  ;;  %v1482_v55 = vpop.eup %1481  ;;  %v835_v24 = vld [vmem:[%s1855_s26 + $0x78] sm:$0xff]  ;;  %v2691_v45 = vld [vmem:[#allocation10_spill] sm:$0xff] }
 0x1ce   : > { %v849_v44 = vmul.f32 %v833_v16, %v2540_v12  ;;  %v864_v25 = vadd.f32 %v848_v5, %v2318_v56  ;;  %v785_v13 = vand.u32 2147483647, %v2500_v3  ;;  %1487 = vlog2.f32 %v2183_v22 }
 0x1cf   : > { %v922_v36 = vadd.f32 %v2062_v19, %v2328_v59  ;;  %v772_v41 = vmul.f32 0.6931472, %v1482_v55  ;;  %v1329_v40 = vpack.c.bf16 %v997_v42, %v996_v26  ;;  %v998_v0 = vsub.f32 %v950_v47, %v969_v38  ;;  %v1484_v6 = vpop.eup %1483 }
 0x1d0   : > { %v865_v1 = vadd.f32 %v849_v44, %v2324_v8  ;;  %880 = vst [vmem:[%s2078_s10 + $0x60] sm:$0xff] %v864_v25  ;;  %v783_v32 = vadd.f32 1.0, %v782_v34  ;;  %1489 = vlog2.f32 %v2220_v31  ;;  %v923_v56 = vadd.f32 %v2110_v11, %v2369_v35  ;;  %v834_v11 = vld [vmem:[%s1855_s26 + $0x70] sm:$0xff] }
 0x1d1   : > { %v924_v22 = vadd.f32 %v2165_v9, %v2412_v62  ;;  %v778_v19 = vsel %vm2522_vm12, %v775_v2, %v772_v41  ;;  %vm563_vm14 = vcmp.ne.f32.partialorder %v2365_v49, %v2365_v49  ;;  %1330 = vmatpush3.bf16.xpose.msra.mxu1 %v1329_v40  ;;  %v971_v8 = vmul.f32 0.6931472, %v1484_v6  ;;  %v2694_v40 = vld [vmem:[#allocation13_spill] sm:$0xff] }
 0x1d2   : > { %881 = vst [vmem:[%s2078_s10 + $0x68] sm:$0xff] %v865_v1  ;;  %1491 = vlog2.f32 %v2265_v60  ;;  %v925_v59 = vadd.f32 %v2203_v50, %v893_v63  ;;  %v2686_v31 = vmax.f32 %v2335_v27, 0.0  ;;  %vm2569_vm15 = vcmp.lt.f32.partialorder %v785_v13, 0.0004427343 }
 0x1d3   : > { %v2689_v9 = vmov 0.0|0.0   ;;  %v1228_v62 = vadd.f32 -1.0, %v2464_v14  ;;  %1493 = vlog2.f32 %v2298_v15  ;;  %v896_v43 = vmul.f32 %v2531_v48, %v2531_v48 }
 0x1d4   : > { %v802_v26 = vadd.f32 %v778_v19, %v2686_v31  ;;  %1331 = vmatprep.subr.bf16.mxu1 %v2689_v9  ;;  %v999_v60 = vsub.f32 %v951_v23, %v971_v8  ;;  %v1229_v46 = vadd.f32 -1.0, %v921_v4  ;;  %1495 = vlog2.f32 %v2356_v54  ;;  %v1486_v50 = vpop.eup %1485 }
 0x1d5   : > { %v784_v7 = vmul.f32 %v2500_v3, %v783_v32  ;;  %1497 = vlog2.f32 %v2436_v17  ;;  %v926_v15 = vadd.f32 %v2283_v33, %v894_v20  ;;  %v897_v14 = vmul.f32 %v2540_v12, %v2540_v12 }
 0x1d6   : > { %v818_v63 = vsel %vm562_vm13, %v2335_v27, %v802_v26  ;;  %v781_v4 = vmul.f32 0.6931472, %v1486_v50  ;;  %v1332_v54 = vpack.c.bf16 %v999_v60, %v998_v0  ;;  %v952_v51 = vmul.f32 0.5, %v1228_v62 }
 0x1d7   : > { %v850_v61 = vmul.f32 %v834_v11, %v818_v63  ;;  %v898_v18 = vmul.f32 %v818_v63, %v818_v63  ;;  %v1230_v39 = vadd.f32 -1.0, %v922_v36  ;;  %v927_v29 = vadd.f32 %v2302_v37, %v895_v58 }
 0x1d8   : > { %v787_v17 = vsel %vm2569_vm15, %v784_v7, %v781_v4  ;;  %1499 = vlog2.f32 %v2471_v30  ;;  %v928_v33 = vadd.f32 %v2349_v28, %v896_v43  ;;  %v1488_v3 = vpop.eup %1487  ;;  %v2690_v20 = vmax.f32 %v2365_v49, 0.0 }
 0x1d9   : > { %v866_v27 = vadd.f32 %v850_v61, %v2344_v10  ;;  %v1231_v16 = vadd.f32 -1.0, %v923_v56  ;;  %v1232_v52 = vadd.f32 -1.0, %v924_v22  ;;  %1501 = vlog2.f32 %v2496_v53  ;;  %1333 = vmatpush3.bf16.xpose.msra.mxu1 %v1332_v54  ;;  %v2692_v53 = vld [vmem:[#allocation11_spill] sm:$0xff] }
 0x1da   : > { %v803_v21 = vadd.f32 %v787_v17, %v2690_v20  ;;  %v953_v37 = vmul.f32 0.5, %v1229_v46  ;;  %v973_v10 = vmul.f32 0.6931472, %v1488_v3  ;;  %v929_v57 = vadd.f32 %v2691_v45, %v897_v14  ;;  %v1490_v30 = vpop.eup %1489  ;;  %1334 = vmatprep.subr.bf16.mxu1 %v2689_v9 }
 0x1db   : > { %882 = vst [vmem:[%s2078_s10 + $0x70] sm:$0xff] %v866_v27  ;;  %1503 = vlog2.f32 %v2531_v48  ;;  %v1233_v47 = vadd.f32 -1.0, %v925_v59  ;;  %v930_v23 = vadd.f32 %v2692_v53, %v898_v18  ;;  %v975_v58 = vmul.f32 0.6931472, %v1490_v30 }
 0x1dc   : > { %v819_v28 = vsel %vm563_vm14, %v2365_v49, %v803_v21  ;;  %1505 = vlog2.f32 %v2540_v12  ;;  %v1492_v5 = vpop.eup %1491  ;;  %v1000_v44 = vsub.f32 %v952_v51, %v973_v10  ;;  %v954_v42 = vmul.f32 0.5, %v1230_v39  ;;  %v2693_v49 = vld [vmem:[#allocation12_spill] sm:$0xff] }
 0x1dd   : > { %v851_v2 = vmul.f32 %v835_v24, %v819_v28  ;;  %v899_v34 = vmul.f32 %v819_v28, %v819_v28  ;;  %v1494_v48 = vpop.eup %1493  ;;  %v955_v38 = vmul.f32 0.5, %v1231_v16  ;;  %v977_v55 = vmul.f32 0.6931472, %v1492_v5 }
 0x1de   : > { %v956_v25 = vmul.f32 0.5, %v1232_v52  ;;  %v1496_v13 = vpop.eup %1495  ;;  %v1001_v1 = vsub.f32 %v953_v37, %v975_v58  ;;  %v979_v41 = vmul.f32 0.6931472, %v1494_v48  ;;  %v957_v32 = vmul.f32 0.5, %v1233_v47 }
 0x1df   : > { %v867_v36 = vadd.f32 %v851_v2, %v2693_v49  ;;  %v931_v12 = vadd.f32 %v2694_v40, %v899_v34  ;;  %v1498_v0 = vpop.eup %1497  ;;  %v1002_v6 = vsub.f32 %v954_v42, %v977_v55  ;;  %v981_v56 = vmul.f32 0.6931472, %v1496_v13 }
 0x1e0   : > { %v1234_v22 = vadd.f32 -1.0, %v926_v15  ;;  %v1335_v19 = vpack.c.bf16 %v1001_v1, %v1000_v44  ;;  %v1003_v8 = vsub.f32 %v955_v38, %v979_v41  ;;  %v983_v59 = vmul.f32 0.6931472, %v1498_v0 }
 0x1e1   : > { %883 = vst [vmem:[%s2078_s10 + $0x78] sm:$0xff] %v867_v36  ;;  %v1235_v31 = vadd.f32 -1.0, %v927_v29  ;;  %v1004_v26 = vsub.f32 %v956_v25, %v981_v56  ;;  %v1236_v11 = vadd.f32 -1.0, %v928_v33  ;;  %1507 = vlog2.f32 %v818_v63 }
 0x1e2   : > { %v1500_v35 = vpop.eup %1499  ;;  %1336 = vmatpush3.bf16.xpose.msra.mxu1 %v1335_v19  ;;  %v1338_v62 = vpack.c.bf16 %v1003_v8, %v1002_v6  ;;  %v1005_v43 = vsub.f32 %v957_v32, %v983_v59  ;;  %v1237_v60 = vadd.f32 -1.0, %v929_v57  ;;  %1509 = vlog2.f32 %v819_v28 }
 0x1e3   : > { %vm1652_vm0 = vmmov 0   ;;  %v2695_v46 = vmov 0.0   ;;  %v1502_v50 = vpop.eup %1501  ;;  %1337 = vmatprep.subr.bf16.mxu1 %v2689_v9  ;;  %v958_v7 = vmul.f32 0.5, %v1234_v22  ;;  %v985_v15 = vmul.f32 0.6931472, %v1500_v35 }
 0x1e4   : > { %1293 = vmatprep.mubr.msk.f32.mxu1 %vm1652_vm0, %v2695_v46  ;;  %v1341_v61 = vpack.c.bf16 %v1005_v43, %v1004_v26  ;;  %v959_v4 = vmul.f32 0.5, %v1235_v31  ;;  %v987_v54 = vmul.f32 0.6931472, %v1502_v50  ;;  %v960_v51 = vmul.f32 0.5, %v1236_v11 }
 0x1e5   : > { %v1504_v14 = vpop.eup %1503  ;;  %v1006_v63 = vsub.f32 %v958_v7, %v985_v15  ;;  %v961_v27 = vmul.f32 0.5, %v1237_v60  ;;  %v1238_v21 = vadd.f32 -1.0, %v930_v23  ;;  %v1239_v24 = vadd.f32 -1.0, %v931_v12 }
 0x1e6   : > { %v1506_v18 = vpop.eup %1505  ;;  %v989_v39 = vmul.f32 0.6931472, %v1504_v14  ;;  %v1007_v29 = vsub.f32 %v959_v4, %v987_v54  ;;  %v1653_v23 = vmov 1.0  }
 0x1e7   : > { %v991_v17 = vmul.f32 0.6931472, %v1506_v18  ;;  %v962_v10 = vmul.f32 0.5, %v1238_v21  ;;  %v963_v57 = vmul.f32 0.5, %v1239_v24 }
 0x1e8   : > { %v1008_v33 = vsub.f32 %v960_v51, %v989_v39  ;;  %v1344_v3 = vpack.c.bf16 %v1007_v29, %v1006_v63 }
 0x1e9   : > { %v1009_v20 = vsub.f32 %v961_v27, %v991_v17 }
 0x1ea   : > { %1339 = vmatpush3.bf16.xpose.msra.mxu1 %v1338_v62 }
 0x1eb   : > { %v1347_v16 = vpack.c.bf16 %v1009_v20, %v1008_v33  ;;  %v1508_v52 = vpop.eup %1507  ;;  %1340 = vmatprep.subr.bf16.mxu1 %v2689_v9 }
 0x1ec   : > { %v1510_v37 = vpop.eup %1509  ;;  %v993_v45 = vmul.f32 0.6931472, %v1508_v52 }
 0x1ed   : > { %v995_v30 = vmul.f32 0.6931472, %v1510_v37 }
 0x1ee   : > { %v1010_v28 = vsub.f32 %v962_v10, %v993_v45 }
 0x1ef   : > { %v1011_v47 = vsub.f32 %v963_v57, %v995_v30 }
 0x1f1   : > { %v1350_v53 = vpack.c.bf16 %v1011_v47, %v1010_v28 }
 0x1f2   : > { %1342 = vmatpush3.bf16.xpose.msra.mxu1 %v1341_v61 }
 0x1f3   : > { %1343 = vmatprep.subr.bf16.mxu1 %v2689_v9 }
 0x1fa   : > { %1345 = vmatpush3.bf16.xpose.msra.mxu1 %v1344_v3 }
 0x1fb   : > { %1346 = vmatprep.subr.bf16.mxu1 %v2689_v9 }
 0x202   : > { %1348 = vmatpush3.bf16.xpose.msra.mxu1 %v1347_v16 }
 0x203   : > { %1349 = vmatprep.subr.bf16.mxu1 %v2689_v9 }
 0x20a   : > { %1351 = vmatpush3.bf16.xpose.msra.mxu1 %v1350_v53 }
 0x211   : > { %1294 = vmatmul.mubr.f32.vlgmr.msra.gmra.mrb[0].mxu1 %v1653_v23 }
 0x2e4   : > { %v1078_v5 = vpop.f32.mrb[0].mxu1 }
 0x2e5   : > { %1082 = vst [vmem:[%s310_s6] sm:$0x1] %v1078_v5  ;;  %v1295_v2 = vpop.f32.mrb[1].mxu1 }
 0x2e6 PF: > { %s2696_s12 = smov %s1754_s18  ;;  %p19_p10 = scmp.ge.s32.totalorder %s1728_s28, 4  }
 0x2e7   : > { %s2697_s18 = smov %s1633_s19  ;;  %s2698_s19 = smov %s1637_s20 }
 0x2e8   : > { %s2699_s20 = smov %s2696_s12  ;;  %s2700_s21 = smov %s1728_s28 }
 0x2e9   :  { %21 = sbr.rel (!%p19_p10) target bundleno = 5 (0x5), region = 105 }
 0x2f0   :  { %1117 = vsyncpa [#allocation3], 1 }
 0x2f1   :  { %1119 = vsyncpa [#allocation3 + $0x1], 1 }
 0x2f2   :  { %1120 = vsyncpa [#allocation5], 1 }
 0x2f3   :  { %1122 = vsyncpa [#allocation5 + $0x1], 1 }

</bundles_post_ra>
